<compile_context>
chip_gen: v6e
topology: v6e:2x2x1
jax: 0.10.0
libtpu: 0.0.40
codegen_flags: <defaults>
</compile_context>

<pallas_src>
import math

import jax
import jax.numpy as jnp
from jax.experimental import pallas as pl
from jax.experimental.pallas import tpu as pltpu


def _round_up(x, m):
    return (x + m - 1) // m * m


_ACTIVATIONS = ("relu", "hardtanh", "leaky_relu", "elu", "gelu")


def _apply_activation(y, activation):
    if activation == "relu":
        return jnp.maximum(y, 0.0)
    if activation == "hardtanh":
        return jnp.clip(y, 0.0, 20.0)
    if activation == "leaky_relu":
        return jnp.where(y >= 0.0, y, 0.01 * y)
    if activation == "elu":
        # clamp the exp argument so the unselected branch never produces inf
        return jnp.where(y >= 0.0, y, jnp.exp(jnp.minimum(y, 0.0)) - 1.0)
    if activation == "gelu":
        return jax.nn.gelu(y, approximate=False)
    raise ValueError(f"unsupported activation: {activation}")


def _make_kernel(activation, has_residual):
    def body(x_ref, w_ref, shift_ref, res_ref, out_ref, acc_ref):
        kt = pl.program_id(2)

        @pl.when(kt == 0)
        def _():
            acc_ref[...] = jnp.zeros_like(acc_ref)

        # One MXU matmul per grid step: bf16 operands, f32 accumulation.
        acc_ref[...] += jnp.dot(w_ref[...], x_ref[...],
                                preferred_element_type=jnp.float32)

        @pl.when(kt == pl.num_programs(2) - 1)
        def _():
            y = acc_ref[...] + shift_ref[...]          # BN shift (scale folded in weight)
            if has_residual:
                y = y + res_ref[...].astype(jnp.float32)
            y = _apply_activation(y, activation)
            # Dropout: eval mode -> identity.
            out_ref[...] = y.astype(out_ref.dtype)

    if has_residual:
        def kernel(x_ref, w_ref, shift_ref, res_ref, out_ref, acc_ref):
            body(x_ref, w_ref, shift_ref, res_ref, out_ref, acc_ref)
    else:
        def kernel(x_ref, w_ref, shift_ref, out_ref, acc_ref):
            body(x_ref, w_ref, shift_ref, None, out_ref, acc_ref)
    return kernel


def jasper_subblock(
    inputs,          # (B, C_in, L) float32, NCL layout (PyTorch Conv1d convention)
    input_lengths,   # (B,) int
    weight,          # (C_out, C_in, K) float32
    bn_gamma, bn_beta, bn_mean, bn_var,    # (C_out,) each
    residual=None,   # (B, C_out, L_out) float32 or None
    *,
    stride=1,
    dilation=1,
    padding=0,
    activation="relu",
    bn_eps=1e-3,
):
    if activation not in _ACTIVATIONS:
        raise ValueError(f"unsupported activation: {activation}")

    B, C_in, L = inputs.shape
    C_out, _, K = weight.shape

    input_lengths = input_lengths.astype(jnp.int32)
    L_out = (L + 2 * padding - dilation * (K - 1) - 1) // stride + 1
    output_lengths = (input_lengths + 2 * padding - dilation * (K - 1) - 1) // stride + 1

    has_residual = residual is not None

    # ---------------- tile selection (lane-dense, VMEM-bounded) ----------------
    # Time tile: multiple of 128, chosen to minimize padding (prefer larger on tie).
    candidates = (512, 384, 256, 128)
    L_TILE = min(candidates, key=lambda lt: (_round_up(max(L_out, 1), lt), -lt))
    L_out_pad = _round_up(max(L_out, 1), L_TILE)
    n_l = L_out_pad // L_TILE

    # Fused contraction dimension: KC = K * C_in, tiled in multiples of 128.
    KC = K * C_in
    BLOCK_BUDGET = 2 * 2**20                     # bytes per bf16 operand block
    kc_by_x = BLOCK_BUDGET // (L_TILE * 2)
    kc_by_w = BLOCK_BUDGET // (C_out * 2)
    KC_TILE = int(min(kc_by_x, kc_by_w, 2048))
    KC_TILE = max(128, (KC_TILE // 128) * 128)
    KC_TILE = min(KC_TILE, _round_up(KC, 128))
    KC_pad = _round_up(KC, KC_TILE)
    n_k = KC_pad // KC_TILE

    # ---------------- XLA glue: mask, pad, tap de-interleave, BN fold ----------------
    time_idx = jnp.arange(L, dtype=jnp.int32)
    mask = (time_idx[None, :] < input_lengths[:, None]).astype(inputs.dtype)
    x_masked = inputs * mask[:, None, :]                 # MaskConv1d input masking

    Lp_needed = (K - 1) * dilation + (L_out_pad - 1) * stride + 1
    pad_right = max(0, Lp_needed - (L + padding))
    x_pad = jnp.pad(x_masked, ((0, 0), (0, 0), (padding, pad_right)))

    # x_taps[b, k*C_in + ci, t] = x_pad[b, ci, t*stride + k*dilation]
    taps = [
        x_pad[:, :, k * dilation: k * dilation + (L_out_pad - 1) * stride + 1: stride]
        for k in range(K)
    ]
    x_taps = jnp.stack(taps, axis=1).reshape(B, KC, L_out_pad)
    if KC_pad > KC:
        x_taps = jnp.pad(x_taps, ((0, 0), (0, KC_pad - KC), (0, 0)))
    x_taps = x_taps.astype(jnp.bfloat16)

    inv_std = 1.0 / jnp.sqrt(bn_var.astype(jnp.float32) + bn_eps)
    scale = bn_gamma.astype(jnp.float32) * inv_std                           # (C_out,)
    shift = (bn_beta.astype(jnp.float32)
             - bn_mean.astype(jnp.float32) * scale).reshape(C_out, 1)        # (C_out, 1)

    w_folded = weight.astype(jnp.float32) * scale[:, None, None]             # fold BN scale
    # w2[co, k*C_in + ci] = w[co, ci, k]  (matches x_taps layout)
    w2 = jnp.transpose(w_folded, (0, 2, 1)).reshape(C_out, KC)
    if KC_pad > KC:
        w2 = jnp.pad(w2, ((0, 0), (0, KC_pad - KC)))
    w2 = w2.astype(jnp.bfloat16)

    if has_residual:
        res_pad = jnp.pad(residual.astype(jnp.float32),
                          ((0, 0), (0, 0), (0, L_out_pad - L_out)))

    # ---------------- pallas_call ----------------
    kernel = _make_kernel(activation, has_residual)

    in_specs = [
        pl.BlockSpec((None, KC_TILE, L_TILE), lambda b, lt, kt: (b, kt, lt)),
        pl.BlockSpec((C_out, KC_TILE), lambda b, lt, kt: (0, kt)),
        pl.BlockSpec((C_out, 1), lambda b, lt, kt: (0, 0)),
    ]
    args = [x_taps, w2, shift]
    if has_residual:
        in_specs.append(
            pl.BlockSpec((None, C_out, L_TILE), lambda b, lt, kt: (b, 0, lt)))
        args.append(res_pad)

    # VMEM bound: double-buffered blocks + f32 accumulator, with headroom.
    est = 2 * (KC_TILE * L_TILE * 2
               + C_out * KC_TILE * 2
               + C_out * 4
               + (C_out * L_TILE * 4 if has_residual else 0)
               + C_out * L_TILE * 4) \
        + C_out * L_TILE * 4
    vmem_limit = int(min(48 * 2**20, max(2 * est, 16 * 2**20)))

    out = pl.pallas_call(
        kernel,
        out_shape=jax.ShapeDtypeStruct((B, C_out, L_out_pad), jnp.float32),
        grid_spec=pltpu.PrefetchScalarGridSpec(
            num_scalar_prefetch=0,
            grid=(B, n_l, n_k),
            in_specs=in_specs,
            out_specs=pl.BlockSpec((None, C_out, L_TILE), lambda b, lt, kt: (b, 0, lt)),
            scratch_shapes=[pltpu.VMEM((C_out, L_TILE), jnp.float32)],
        ),
        compiler_params=pltpu.CompilerParams(
            dimension_semantics=("parallel", "parallel", "arbitrary"),
            vmem_limit_bytes=vmem_limit,
        ),
    )(*args)

    return out[:, :, :L_out], output_lengths


def _reference(inputs, input_lengths, weight, gamma, beta, mean, var, residual,
               stride, dilation, padding, eps, activation):
    L = inputs.shape[-1]
    K = weight.shape[-1]
    mask = (jnp.arange(L)[None, :] < input_lengths[:, None]).astype(inputs.dtype)
    x = inputs * mask[:, None, :]
    y = jax.lax.conv_general_dilated(
        x, weight, window_strides=(stride,), padding=[(padding, padding)],
        rhs_dilation=(dilation,), dimension_numbers=("NCH", "OIH", "NCH"))
    y = (y - mean[None, :, None]) / jnp.sqrt(var[None, :, None] + eps)
    y = y * gamma[None, :, None] + beta[None, :, None]
    if residual is not None:
        y = y + residual
    y = _apply_activation(y, activation)
    out_len = (input_lengths + 2 * padding - dilation * (K - 1) - 1) // stride + 1
    return y, out_len


if __name__ == "__main__":
    tests = []

    # Test 1: residual + relu, stride=1, dilation=1, padding=1.
    B, C_in, C_out, L = 2, 4, 8, 16
    K, stride, dilation, padding = 3, 1, 1, 1
    L_out = (L + 2 * padding - dilation * (K - 1) - 1) // stride + 1
    ks = jax.random.split(jax.random.PRNGKey(0), 8)
    tests.append(dict(
        inputs=jax.random.normal(ks[0], (B, C_in, L), jnp.float32),
        input_lengths=jnp.array([16, 11], jnp.int32),
        weight=jax.random.normal(ks[1], (C_out, C_in, K), jnp.float32) / math.sqrt(C_in * K),
        gamma=1.0 + 0.1 * jax.random.normal(ks[2], (C_out,), jnp.float32),
        beta=0.1 * jax.random.normal(ks[3], (C_out,), jnp.float32),
        mean=0.1 * jax.random.normal(ks[4], (C_out,), jnp.float32),
        var=jnp.abs(1.0 + 0.1 * jax.random.normal(ks[5], (C_out,), jnp.float32)),
        residual=jax.random.normal(ks[6], (B, C_out, L_out), jnp.float32),
        stride=stride, dilation=dilation, padding=padding, activation="relu"))

    # Test 2: no residual, hardtanh, stride=2, dilation=2, padding=2.
    B, C_in, C_out, L = 2, 8, 16, 20
    K, stride, dilation, padding = 5, 2, 2, 2
    ks = jax.random.split(jax.random.PRNGKey(1), 8)
    tests.append(dict(
        inputs=jax.random.normal(ks[0], (B, C_in, L), jnp.float32),
        input_lengths=jnp.array([20, 13], jnp.int32),
        weight=jax.random.normal(ks[1], (C_out, C_in, K), jnp.float32) / math.sqrt(C_in * K),
        gamma=1.0 + 0.1 * jax.random.normal(ks[2], (C_out,), jnp.float32),
        beta=0.1 * jax.random.normal(ks[3], (C_out,), jnp.float32),
        mean=0.1 * jax.random.normal(ks[4], (C_out,), jnp.float32),
        var=jnp.abs(1.0 + 0.1 * jax.random.normal(ks[5], (C_out,), jnp.float32)),
        residual=None,
        stride=stride, dilation=dilation, padding=padding, activation="hardtanh"))

    for t in tests:
        out, out_lens = jasper_subblock(
            t["inputs"], t["input_lengths"], t["weight"],
            t["gamma"], t["beta"], t["mean"], t["var"],
            residual=t["residual"], stride=t["stride"], dilation=t["dilation"],
            padding=t["padding"], activation=t["activation"], bn_eps=1e-3)
        out = jax.block_until_ready(out)
        out_lens = jax.block_until_ready(out_lens)

        ref_out, ref_lens = _reference(
            t["inputs"], t["input_lengths"], t["weight"],
            t["gamma"], t["beta"], t["mean"], t["var"], t["residual"],
            t["stride"], t["dilation"], t["padding"], 1e-3, t["activation"])

        assert out.shape == ref_out.shape, (out.shape, ref_out.shape)
        max_err = float(jnp.max(jnp.abs(out - ref_out)))
        assert max_err < 2e-2, max_err          # bf16 matmul operands, f32 accumulation
        assert jnp.array_equal(out_lens, ref_lens)

    print("KERNEL_OK")
</pallas_src>

<mosaic_0001>
module attributes {stable_mosaic.version = 11 : i64} {
  func.func @kernel(%arg0: i32, %arg1: i32, %arg2: i32, %arg3: memref<1x128x128xbf16, #tpu.memory_space<vmem>>, %arg4: memref<8x128xbf16, #tpu.memory_space<vmem>>, %arg5: memref<8x1xf32, #tpu.memory_space<vmem>>, %arg6: memref<1x8x128xf32, #tpu.memory_space<vmem>>, %arg7: memref<1x8x128xf32, #tpu.memory_space<vmem>>, %arg8: memref<8x128xf32, #tpu.memory_space<vmem>>) attributes {dimension_semantics = [#tpu.dimension_semantics<parallel>, #tpu.dimension_semantics<parallel>, #tpu.dimension_semantics<arbitrary>], iteration_bounds = array<i64: 2, 1, 1>, scalar_prefetch = 0 : i64, scratch_operands = 1 : i64, tpu.core_type = #tpu.core_type<tc>, window_params = [{transform_indices = @transform_0, window_bounds = array<i64: 1, 128, 128>}, {transform_indices = @transform_1, window_bounds = array<i64: 8, 128>}, {pipeline_mode = #tpu.pipeline_mode<synchronous>, transform_indices = @transform_2, window_bounds = array<i64: 8, 1>}, {transform_indices = @transform_3, window_bounds = array<i64: 1, 8, 128>}, {transform_indices = @transform_4, window_bounds = array<i64: 1, 8, 128>}]} {
    %c0_i32 = arith.constant 0 : i32
    %0 = arith.cmpi eq, %arg2, %c0_i32 : i32
    %1 = arith.extui %0 : i1 to i32
    %c0_i32_0 = arith.constant 0 : i32
    %2 = arith.cmpi ne, %1, %c0_i32_0 : i32
    scf.if %2 {
      %cst_11 = arith.constant 0.000000e+00 : f32
      %13 = vector.broadcast %cst_11 : f32 to vector<8x128xf32>
      %c0_12 = arith.constant 0 : index
      %c0_13 = arith.constant 0 : index
      %14 = vector.load %arg8[%c0_12, %c0_13] : memref<8x128xf32, #tpu.memory_space<vmem>>, vector<8x128xf32>
      tpu.vector_store %arg8[%c0_12, %c0_13], %13 {strides = array<i32>} : memref<8x128xf32, #tpu.memory_space<vmem>>, vector<8x128xf32>,
    } else {
    }
    %c0 = arith.constant 0 : index
    %c0_1 = arith.constant 0 : index
    %3 = vector.load %arg8[%c0, %c0_1] : memref<8x128xf32, #tpu.memory_space<vmem>>, vector<8x128xf32>
    %c0_2 = arith.constant 0 : index
    %c0_3 = arith.constant 0 : index
    %4 = vector.load %arg4[%c0_2, %c0_3] : memref<8x128xbf16, #tpu.memory_space<vmem>>, vector<8x128xbf16>
    %c0_4 = arith.constant 0 : index
    %c0_5 = arith.constant 0 : index
    %c0_6 = arith.constant 0 : index
    %5 = vector.load %arg3[%c0_4, %c0_5, %c0_6] : memref<1x128x128xbf16, #tpu.memory_space<vmem>>, vector<1x128x128xbf16>
    %6 = vector.shape_cast %5 : vector<1x128x128xbf16> to vector<128x128xbf16>
    %cst = arith.constant dense<0.000000e+00> : vector<8x128xf32>
    %7 = tpu.matmul %4, %6, %cst {dimension_numbers = #tpu.dot_dimension_numbers<[1], [0], [0], [1], [0, 0, 1, 1], [], []>} : vector<8x128xbf16>, vector<128x128xbf16>, vector<8x128xf32> -> vector<8x128xf32>
    %8 = arith.addf %3, %7 : vector<8x128xf32>
    %c0_7 = arith.constant 0 : index
    %c0_8 = arith.constant 0 : index
    %9 = vector.load %arg8[%c0_7, %c0_8] : memref<8x128xf32, #tpu.memory_space<vmem>>, vector<8x128xf32>
    tpu.vector_store %arg8[%c0_7, %c0_8], %8 {strides = array<i32>} : memref<8x128xf32, #tpu.memory_space<vmem>>, vector<8x128xf32>,
    %c0_i32_9 = arith.constant 0 : i32
    %10 = arith.cmpi eq, %arg2, %c0_i32_9 : i32
    %11 = arith.extui %10 : i1 to i32
    %c0_i32_10 = arith.constant 0 : i32
    %12 = arith.cmpi ne, %11, %c0_i32_10 : i32
    scf.if %12 {
      %c0_11 = arith.constant 0 : index
      %c0_12 = arith.constant 0 : index
      %13 = vector.load %arg8[%c0_11, %c0_12] : memref<8x128xf32, #tpu.memory_space<vmem>>, vector<8x128xf32>
      %c0_13 = arith.constant 0 : index
      %c0_14 = arith.constant 0 : index
      %14 = vector.load %arg5[%c0_13, %c0_14] : memref<8x1xf32, #tpu.memory_space<vmem>>, vector<8x1xf32>
      %15 = vector.broadcast %14 : vector<8x1xf32> to vector<8x128xf32>
      %16 = arith.addf %13, %15 : vector<8x128xf32>
      %c0_15 = arith.constant 0 : index
      %c0_16 = arith.constant 0 : index
      %c0_17 = arith.constant 0 : index
      %17 = vector.load %arg6[%c0_15, %c0_16, %c0_17] : memref<1x8x128xf32, #tpu.memory_space<vmem>>, vector<1x8x128xf32>
      %18 = vector.shape_cast %17 : vector<1x8x128xf32> to vector<8x128xf32>
      %19 = arith.addf %16, %18 : vector<8x128xf32>
      %cst_18 = arith.constant 0.000000e+00 : f32
      %20 = vector.broadcast %cst_18 : f32 to vector<8x128xf32>
      %21 = arith.maximumf %19, %20 : vector<8x128xf32>
      %c0_19 = arith.constant 0 : index
      %c0_20 = arith.constant 0 : index
      %c0_21 = arith.constant 0 : index
      %22 = vector.load %arg7[%c0_19, %c0_20, %c0_21] : memref<1x8x128xf32, #tpu.memory_space<vmem>>, vector<1x8x128xf32>
      %23 = vector.shape_cast %22 : vector<1x8x128xf32> to vector<8x128xf32>
      %24 = vector.shape_cast %21 : vector<8x128xf32> to vector<1x8x128xf32>
      tpu.vector_store %arg7[%c0_19, %c0_20, %c0_21], %24 {strides = array<i32>} : memref<1x8x128xf32, #tpu.memory_space<vmem>>, vector<1x8x128xf32>,
    } else {
    }
    return
  }
  func.func @transform_0(%arg0: i32, %arg1: i32, %arg2: i32) -> (i32, i32, i32) {
    %c0_i32 = arith.constant 0 : i32
    return %arg0, %arg2, %arg1 : i32, i32, i32
  }
  func.func @transform_1(%arg0: i32, %arg1: i32, %arg2: i32) -> (i32, i32) {
    %c0_i32 = arith.constant 0 : i32
    %c0_i32_0 = arith.constant 0 : i32
    return %c0_i32, %arg2 : i32, i32
  }
  func.func @transform_2(%arg0: i32, %arg1: i32, %arg2: i32) -> (i32, i32) {
    %c0_i32 = arith.constant 0 : i32
    %c0_i32_0 = arith.constant 0 : i32
    %c0_i32_1 = arith.constant 0 : i32
    return %c0_i32, %c0_i32_0 : i32, i32
  }
  func.func @transform_3(%arg0: i32, %arg1: i32, %arg2: i32) -> (i32, i32, i32) {
    %c0_i32 = arith.constant 0 : i32
    %c0_i32_0 = arith.constant 0 : i32
    return %arg0, %c0_i32, %arg1 : i32, i32, i32
  }
  func.func @transform_4(%arg0: i32, %arg1: i32, %arg2: i32) -> (i32, i32, i32) {
    %c0_i32 = arith.constant 0 : i32
    %c0_i32_0 = arith.constant 0 : i32
    return %arg0, %c0_i32, %arg1 : i32, i32, i32
  }
}

</mosaic_0001>

<bundles_post_ra>
// kernel: tpu_custom_call.1
= control target key start
LH: loop header
LB: loop body
LE: loop exit
PB: predicated region body
PF: predicated region fallthrough
CT: control target
= control target key end

     0   :  { %s1074_s0 = inlined_call_operand.hbm [shape: bf16[2,128,128], index: 0, kind: input, shape index: {}]   ;;  %s1075_s1 = inlined_call_operand.vmem [shape: bf16[8,128], index: 1, kind: input, shape index: {}]   ;;  %s1076_s2 = inlined_call_operand.vmem [shape: f32[8,1], index: 2, kind: input, shape index: {}]   ;;  %s1077_s3 = inlined_call_operand.hbm [shape: f32[2,8,128], index: 3, kind: input, shape index: {}]   ;;  %s1078_s4 = inlined_call_operand.hbm [shape: f32[2,8,128], index: 4, kind: output, shape index: {}]  }
   0x1   :  { %1080 = sst [smem:[#allocation13_spill]] %s1074_s0 }
   0x2   :  { %9 = vsyncpa [#allocation4], 0 }
   0x3   :  { %11 = vsyncpa [#allocation4 + $0x1], 0 }
   0x4   :  { %12 = vsyncpa [#allocation7], 0 }
   0x5   :  { %14 = vsyncpa [#allocation7 + $0x1], 0 }
   0x6   :  { %15 = vsyncpa [#allocation5], 0 }
   0x7   :  { %17 = vsyncpa [#allocation5 + $0x1], 0  ;;  %s883_s15 = smov 0   ;;  %s885_s16 = smov 0  }
   0x8   :  { %s887_s17 = smov 0   ;;  %s889_s18 = smov 0  }
   0x9   :  { %s891_s19 = smov 0   ;;  %s893_s20 = smov 0  }
   0xa LB: > { %s571_s21 = sadd.s32 4294967295, %s848_s20   ;;  %s572_s22 = sadd.s32 4294967294, %s848_s20   ;;  %s848_s20 = sphi %s893_s20, %s23_s20   ;;  %s844_s19 = sphi %s891_s19, %s1094_s19   ;;  %s840_s18 = sphi %s889_s18, %s1093_s18   ;;  %s836_s17 = sphi %s887_s17, %s1092_s17   ;;  %s832_s16 = sphi %s885_s16, %s1091_s16   ;;  %s828_s15 = sphi %s883_s15, %s1090_s15  }
   0xb   : > { %s42_s23 = sadd.s32 1, %s844_s19  ;;  %s53_s24 = sadd.s32 1, %s836_s17 }
   0xc   : > { %p44_p0 = scmp.ge.s32.totalorder %s42_s23, 2  ;;  %p60_p1 = scmp.ne.s32.totalorder %s836_s17, %s832_s16 }
   0xd   : > { %p61_p2 = scmp.eq.s32.totalorder %s848_s20, 0  ;;  %p66_p3 = scmp.ne.s32.totalorder %s832_s16, %s828_s15 }
   0xe   : > { %s1096_s23 = smov (%p44_p0, %s42_s23), 0  ;;  %p67_p5 = scmp.eq.s32.totalorder %s571_s21, 0 }
   0xf   : > { %1081 = sst [smem:[#allocation12_spill]] %s1096_s23  ;;  %p924_p4 = por %p61_p2, %p60_p1 }
  0x10   : > { %s46_s26 = ssub.s32 %s844_s19, %s1096_s23  ;;  %p167_p6 = scmp.eq.s32.totalorder %s571_s21, 1 }
  0x11   : > { %p51_p7 = scmp.eq.s32.totalorder %s46_s26, 0  ;;  %p930_p8 = por %p67_p5, %p66_p3 }
  0x12   : > { %p934_p9 = por %p167_p6, %p60_p1  ;;  %p173_p10 = scmp.eq.s32.totalorder %s572_s22, 1 }
  0x13   : > { %s939_s29 = scalar_select %p51_p7, %s836_s17, %s53_s24  }
  0x14   : > { %p941_p11 = por %p173_p10, %p66_p3  ;;  %p575_p12 = scmp.ge.s32.totalorder %s848_s20, 2 }
  0x15   : > { %p644_p13 = scmp.lt.s32.totalorder %s848_s20, 2  ;;  %s948_s5 = sand.u32 1, %s836_s17  }
  0x16   : > { %s576_s6 = sshll.u32 %s948_s5, 6  ;;  %s597_s7 = sshll.u32 %s844_s19, 10 }
  0x17   : > { %s1086_s0 = sld [smem:[#allocation13_spill]]  ;;  %s207_s11 = scalar_lea.vmem [#allocation3], %s576_s6 }
  0x18   : > { %s217_s12 = sshll.u32 %s207_s11, 4  ;;  %p957_p0 = pnand %p644_p13, %p924_p4  ;;  %s218_s12 = int_to_ptr.vmem [resolvable:$true] %s217_s12 }
  0x19   : > { %p581_p1 = scmp.ge.s32.totalorder %s848_s20, 1  ;;  %s204_s14 = scalar_lea.sflag [#allocation4], %s948_s5 }
  0x1a   : > { %p710_p2 = pneg %p957_p0  ;;  %s721_s21 = scalar_lea.vmem %s218_s12, 1024 }
  0x1b   : > { %p722_p3 = scmp.ne.s32.totalorder %s218_s12, %s721_s21  ;;  %s850_s22 = smov [#allocation3]  }
  0x1c   : > { %s726_s24 = sshll.u32 %s850_s22, 4  ;;  %s727_s24 = int_to_ptr.vmem [resolvable:$false] %s726_s24 }
  0x1d   : > { %s216_s10 = scalar_lea.hbm %s1086_s0, %s597_s7  ;;  %p724_p5 = pnand %p722_p3, %p710_p2 }
  0x1e   : > { %s728_s25 = scalar_lea.vmem %s727_s24, 2048  ;;  %p729_p4 = scmp.lt.s32.totalorder %s218_s12, %s727_s24 }
  0x1f   : > { %p725_p6 = pneg %p724_p5  ;;  %p730_p7 = scmp.lt.s32.totalorder %s728_s25, %s721_s21 }
  0x21   : > { %p731_p10 = por %p730_p7, %p729_p4 }
  0x23   : > { %p732_p13 = pnand %p731_p10, %p725_p6 }
  0x25   : > { %735 = shalt.err (!%p732_p13)
}
  0x26   : > { %s851_s26 = smov 64   ;;  %s852_s6 = smov 4  }
  0x27   : > { %636 = dma.hbm_to_vmem [thread:$0]  (!%p957_p0), %s216_s10, 1024, %s218_s12, %s204_s14, %s851_s26, %s851_s26, %s852_s6  }
  0x28   : > { %p244_p3 = scmp.lt.s32.totalorder %s848_s20, 3  ;;  %s579_s7 = sshll.u32 %s948_s5, 3 }
  0x29   : > { %s580_s8 = sshll.u32 %s844_s19, 7  ;;  %s231_s24 = scalar_lea.vmem [#allocation6], %s579_s7 }
  0x2a   : > { %p975_p5 = pnand %p581_p1, %p244_p3  ;;  %s237_s22 = scalar_lea.hbm %s1077_s3, %s580_s8 }
  0x2b   : > { %s239_s25 = sshll.u32 %s231_s24, 4  ;;  %s228_s0 = scalar_lea.sflag [#allocation7], %s948_s5  ;;  %s240_s25 = int_to_ptr.vmem [resolvable:$true] %s239_s25 }
  0x2c   : > { %s749_s23 = scalar_lea.vmem %s240_s25, 128  ;;  %s853_s10 = smov [#allocation6]  }
  0x2d   : > { %p750_p6 = scmp.ne.s32.totalorder %s240_s25, %s749_s23  ;;  %s754_s12 = sshll.u32 %s853_s10, 4  ;;  %s755_s12 = int_to_ptr.vmem [resolvable:$false] %s754_s12 }
  0x2e   : > { %s756_s14 = scalar_lea.vmem %s755_s12, 256  ;;  %p757_p1 = scmp.lt.s32.totalorder %s240_s25, %s755_s12 }
  0x2f   : > { %p752_p4 = pnand %p750_p6, %p710_p2  ;;  %p758_p10 = scmp.lt.s32.totalorder %s756_s14, %s749_s23 }
  0x31   : > { %p753_p7 = pneg %p752_p4  ;;  %p759_p13 = por %p758_p10, %p757_p1 }
  0x33   : > { %p760_p3 = pnand %p759_p13, %p753_p7 }
  0x35   : > { %763 = shalt.err (!%p760_p3)
}
  0x36   : > { %639 = dma.hbm_to_vmem [thread:$0]  (!%p957_p0), %s237_s22, 128, %s240_s25, %s228_s0  }
  0x37   : > { %248 = sbr.rel (%p975_p5) target bundleno = 309 (0x135), region = 36  ;;  %s991_s5 = sand.u32 (!%p975_p5), 1, %s832_s16  }
  0x38   : > { %s582_s26 = sshll.u32 (!%p975_p5), %s991_s5, 6  ;;  %s251_s6 = scalar_lea.sflag (!%p975_p5), [#allocation4], %s991_s5 }
  0x39   : > { %s995_s7 = scalar_lea.vmem (!%p975_p5), [#allocation3], %s582_s26 }
  0x3c   : > { %815 = dma.done.wait (%p930_p8), %s251_s6, 1024  }
  0x3d   : > { %817 = vsyncadd (%p930_p8), %s251_s6, 4294966272  ;;  %s583_s0 = sshll.u32 %s991_s5, 3  ;;  %s260_s23 = scalar_lea.sflag [#allocation7], %s991_s5 }
  0x3e   : > { %s1005_s13 = scalar_lea.vmem [#allocation6], %s583_s0 }
  0x3f   : > { %819 = dma.done.wait (%p930_p8), %s260_s23, 128  }
  0x40   : > { %821 = vsyncadd (%p930_p8), %s260_s23, 4294967168  ;;  %v854_v0 = vmov 0.0   ;;  %vm855_vm0 = vmmov 0   ;;  %v856_v1 = vmov 0   ;;  %v700_v2 = vld [vmem:[%s995_s7 + $0x38] sm:$0xff]   ;;  %v701_v3 = vld [vmem:[%s995_s7 + $0x30] sm:$0xff]  }
  0x41   : > { %607 = vmatprep.subr.bf16.mxu0 %v854_v0  ;;  %623 = vmatprep.mubr.msk.bf16.mxu0 %vm855_vm0, %v854_v0  ;;  %v702_v4 = vld [vmem:[%s995_s7 + $0x28] sm:$0xff]   ;;  %v420_v5 = vld [vmem:[%s1076_s2] sm:$0xff]  ;;  %v704_v7 = vld [vmem:[%s995_s7 + $0x18] sm:$0xff]   ;;  %s594_s21 = sshll.u32 %s840_s18, 7  ;;  %s296_s22 = scalar_lea.vmem [#allocation8], %s583_s0 }
  0x42   : > { %699 = vset.pattern.permute.xlu0 %v856_v1  ;;  %608 = vmatpush3.bf16.msra.mxu0 %v700_v2  ;;  %v703_v6 = vld [vmem:[%s995_s7 + $0x20] sm:$0xff]   ;;  %v705_v8 = vld [vmem:[%s995_s7 + $0x10] sm:$0xff]   ;;  %v706_v9 = vld [vmem:[%s995_s7 + $0x8] sm:$0xff]   ;;  %s446_s24 = sshll.u32 %s296_s22, 4  ;;  %s1032_s12 = scalar_lea.hbm %s1078_s4, %s594_s21  ;;  %s447_s24 = int_to_ptr.vmem [resolvable:$true] %s446_s24 }
  0x43   : > { %609 = vmatprep.subr.bf16.mxu0 %v854_v0  ;;  %423 = vperm.xlu0 %699, %v420_v5   ;;  %v707_v10 = vld [vmem:[%s995_s7] sm:$0xff]   ;;  %s432_s14 = scalar_lea.sflag [#allocation5], %s991_s5  ;;  %s764_s26 = scalar_lea.vmem %s447_s24, 128 }
  0x44   : > { %v309_v11 = vld [vmem:[%s1075_s1] sm:$0xf]  ;;  %p765_p8 = scmp.ne.s32.totalorder %s447_s24, %s764_s26  ;;  %s857_s18 = smov [#allocation8]  }
  0x45   : > { %v427_v14 = vld [vmem:[%s1005_s13] sm:$0xff]  ;;  %s768_s6 = sshll.u32 %s857_s18, 4  ;;  %s769_s6 = int_to_ptr.vmem [resolvable:$false] %s768_s6 }
  0x46   : > { %610 = vmatpush3.bf16.msra.mxu0 %v701_v3  ;;  %p766_p0 = pnand %p765_p8, %p934_p9  ;;  %s770_s7 = scalar_lea.vmem %s769_s6, 256 }
  0x47   : > { %611 = vmatprep.subr.bf16.mxu0 %v854_v0  ;;  %p771_p5 = scmp.lt.s32.totalorder %s447_s24, %s769_s6  ;;  %p772_p6 = scmp.lt.s32.totalorder %s770_s7, %s764_s26 }
  0x48   : > { %p767_p2 = pneg %p766_p0 }
  0x49   : > { %p773_p4 = por %p772_p6, %p771_p5 }
  0x4a   : > { %612 = vmatpush3.bf16.msra.mxu0 %v702_v4 }
  0x4b   : > { %613 = vmatprep.subr.bf16.mxu0 %v854_v0  ;;  %p774_p7 = pnand %p773_p4, %p767_p2 }
  0x4e   : > { %614 = vmatpush3.bf16.msra.mxu0 %v703_v6 }
  0x4f   : > { %615 = vmatprep.subr.bf16.mxu0 %v854_v0 }
  0x52   : > { %616 = vmatpush3.bf16.msra.mxu0 %v704_v7 }
  0x53   : > { %617 = vmatprep.subr.bf16.mxu0 %v854_v0 }
  0x56   : > { %618 = vmatpush3.bf16.msra.mxu0 %v705_v8 }
  0x57   : > { %619 = vmatprep.subr.bf16.mxu0 %v854_v0 }
  0x5a   : > { %620 = vmatpush3.bf16.msra.mxu0 %v706_v9 }
  0x5b   : > { %621 = vmatprep.subr.bf16.mxu0 %v854_v0 }
  0x5e   : > { %622 = vmatpush3.bf16.msra.mxu0 %v707_v10 }
  0x61   : > { %624 = vmatmul.mubr.bf16.vlgmr.msra.gmra.mxu0 %v309_v11 }
  0xbe   : > { %v424_v12 = vpop.permute.xlu0 %423 }
 0x121   : > { %v408_v13 = vpop.f32.mrf.mxu0 }
 0x122   : > { %v426_v15 = vadd.f32 %v424_v12, %v408_v13 }
 0x123   : > { %v625_v16 = vpop.f32.mrf.mxu0 }
 0x124   : > { %v428_v17 = vadd.f32 %v427_v14, %v426_v15 }
 0x125   : > { %v411_v18 = vpop.f32.mrf.mxu0 }
 0x126   : > { %v429_v19 = vmax.f32 %v428_v17, 0.0 }
 0x127   : > { %v626_v20 = vpop.f32.mrf.mxu0 }
 0x128   : > { %430 = vst [vmem:[%s296_s22] sm:$0xff] %v429_v19 }
 0x129   : > { %777 = shalt.err (!%p774_p7)
}
 0x12a   : > { %s778_s0 = scalar_lea.hbm %s1032_s12, 128  ;;  %s782_s13 = scalar_lea.hbm %s1078_s4, 256 }
 0x12b   : > { %p779_p1 = scmp.ne.s32.totalorder %s1032_s12, %s778_s0  ;;  %p783_p3 = scmp.lt.s32.totalorder %s1032_s12, %s1078_s4 }
 0x12c   : > { %p784_p8 = scmp.lt.s32.totalorder %s782_s13, %s778_s0 }
 0x12d   : > { %p780_p10 = pnand %p779_p1, %p934_p9 }
 0x12e   : > { %p785_p0 = por %p784_p8, %p783_p3 }
 0x12f   : > { %p781_p13 = pneg %p780_p10 }
 0x131   : > { %p786_p2 = pnand %p785_p0, %p781_p13 }
 0x133   : > { %789 = shalt.err (!%p786_p2)
}
 0x134   : > { %631 = dma.vmem_to_hbm [thread:$0]  (%p934_p9), %s447_s24, 128, %s1032_s12, %s432_s14  }
 0x135 PF: > { %s458_s9 = sand.u32 1, %s828_s15   ;;  %p641_p5 = pnand %p575_p12, %p941_p11 }
 0x136   : > { %s459_s11 = scalar_lea.sflag [#allocation5], %s458_s9 }
 0x137   : > { %p642_p6 = pneg %p641_p5 }
 0x139   : > { %823 = dma.done.wait (%p642_p6), %s459_s11, 128  }
 0x13a   : > { %825 = vsyncadd (%p642_p6), %s459_s11, 4294967168  ;;  %s23_s20 = sadd.s32 1, %s848_s20   ;;  %s1089_s28 = sld [smem:[#allocation12_spill]] }
 0x13b   : > { %p20_p4 = scmp.ge.s32.totalorder %s23_s20, 4   ;;  %s1090_s15 = smov %s832_s16 }
 0x13c   : > { %s1091_s16 = smov %s836_s17  ;;  %s1092_s17 = smov %s939_s29 }
 0x13d   : > { %s1093_s18 = smov %s844_s19  ;;  %22 = sbr.rel (!%p20_p4) target bundleno = 10 (0xa), region = 105 }
 0x140   : > { %s1094_s19 = smov %s1089_s28 }
 0x142   :  { %464 = vsyncpa [#allocation4], 1 }
 0x143   :  { %466 = vsyncpa [#allocation4 + $0x1], 1 }
 0x144   :  { %467 = vsyncpa [#allocation7], 1 }
 0x145   :  { %469 = vsyncpa [#allocation7 + $0x1], 1 }
 0x146   :  { %470 = vsyncpa [#allocation5], 1 }
 0x147   :  { %472 = vsyncpa [#allocation5 + $0x1], 1 }

</bundles_post_ra>
